<compile_context>
chip_gen: v6e
topology: v6e:2x2x1
jax: 0.10.0
libtpu: 0.0.40
codegen_flags: <defaults>
</compile_context>

<pallas_src>
import functools
import math

import jax
import jax.numpy as jnp
import numpy as np
from jax import lax
from jax.experimental import pallas as pl
from jax.experimental.pallas import tpu as pltpu

_BALANCING_WEIGHTS = (1.0, 1.0, 2.0, 5.0, 10.0, 30.0)
_THRESHOLDS = (0.104712042, 0.209424084, 0.314136126, 0.418848168, 0.523560209)


def _round_up(x, m):
    return ((x + m - 1) // m) * m


def _row_granularity(dtype):
    # Sublane packing: f32 -> 8, bf16/f16 -> 16, int8/fp8 -> 32.
    return max(8, 32 // jnp.dtype(dtype).itemsize)


def _make_rows_kernel(D, TD, mask_cols):
    """Builds the fused weighted-error row-reduction kernel."""

    def kernel(x_ref, t_ref, mse_ref, mae_ref):
        # x_ref, t_ref     : (TM, TD) block of flattened input / target.
        # mse_ref, mae_ref : (TM, 1) f32 per-row accumulators, resident across
        #                    the reduction grid axis (same block for every j).
        j = pl.program_id(1)

        @pl.when(j == 0)
        def _init():
            mse_ref[...] = jnp.zeros_like(mse_ref)
            mae_ref[...] = jnp.zeros_like(mae_ref)

        x = x_ref[...].astype(jnp.float32)
        t = t_ref[...].astype(jnp.float32)

        # Balancing weights: piecewise-constant function of target, built from
        # statically unrolled threshold comparisons (zero deltas skipped).
        w = jnp.full_like(t, _BALANCING_WEIGHTS[0])
        for i, thr in enumerate(_THRESHOLDS):
            delta = _BALANCING_WEIGHTS[i + 1] - _BALANCING_WEIGHTS[i]
            if delta != 0.0:
                w = w + delta * (t >= thr).astype(jnp.float32)

        a = jnp.abs(x - t)
        mae_term = w * a          # weights * |input - target|
        mse_term = mae_term * a   # weights * (input - target)^2

        if mask_cols:
            # Last D-tile extends past the array; zero the out-of-bounds lanes
            # (select, so any garbage/NaN in the OOB region cannot leak in).
            cols = j * TD + lax.broadcasted_iota(jnp.int32, x.shape, 1)
            valid = cols < D
            mse_term = jnp.where(valid, mse_term, 0.0)
            mae_term = jnp.where(valid, mae_term, 0.0)

        mse_ref[...] += jnp.sum(mse_term, axis=1, keepdims=True)
        mae_ref[...] += jnp.sum(mae_term, axis=1, keepdims=True)

    return kernel


def _weighted_row_sums(x2d, t2d, *, tile_m=256, tile_d=2048):
    """Per-row weighted sum-of-squared-errors / sum-of-abs-errors.

    x2d, t2d: (M, D) arrays (any float dtype).  Returns (mse_rows, mae_rows),
    each shape (M,), float32.
    """
    M, D = x2d.shape
    gran = max(_row_granularity(x2d.dtype), _row_granularity(t2d.dtype))
    TM = min(tile_m, _round_up(M, gran))
    TD = min(tile_d, _round_up(D, 128))
    grid = (pl.cdiv(M, TM), pl.cdiv(D, TD))
    mask_cols = (D % TD) != 0

    kernel = _make_rows_kernel(D, TD, mask_cols)

    mse_rows, mae_rows = pl.pallas_call(
        kernel,
        out_shape=(jax.ShapeDtypeStruct((M, 1), jnp.float32),
                   jax.ShapeDtypeStruct((M, 1), jnp.float32)),
        grid=grid,
        in_specs=[
            pl.BlockSpec((TM, TD), lambda i, j: (i, j)),
            pl.BlockSpec((TM, TD), lambda i, j: (i, j)),
        ],
        out_specs=(
            pl.BlockSpec((TM, 1), lambda i, j: (i, 0)),
            pl.BlockSpec((TM, 1), lambda i, j: (i, 0)),
        ),
        compiler_params=pltpu.CompilerParams(
            dimension_semantics=("parallel", "arbitrary")),
    )(x2d, t2d)

    return mse_rows[:, 0], mae_rows[:, 0]


@functools.partial(
    jax.jit,
    static_argnames=("mse_weight", "mae_weight",
                     "normal_loss_global_scale", "lam"))
def weighted_mse_mae(inp, target, *, mse_weight=1.0, mae_weight=1.0,
                     normal_loss_global_scale=5e-5, lam=None):
    """JAX/Pallas equivalent of Weighted_mse_mae.forward(input, target)."""
    assert inp.shape == target.shape and inp.ndim == 5
    S, B = inp.shape[0], inp.shape[1]
    M = S * B
    D = math.prod(inp.shape[2:])

    # Keep the native dtype here; the kernel casts to f32 on-chip.
    x2d = inp.reshape(M, D)
    t2d = target.reshape(M, D)

    mse_rows, mae_rows = _weighted_row_sums(x2d, t2d)
    mse = mse_rows.reshape(S, B)
    mae = mae_rows.reshape(S, B)

    if lam is not None:
        # torch.arange(1.0, 1.0 + S*lambda, lambda) == 1 + lambda*arange(S)
        tw = 1.0 + lam * jnp.arange(S, dtype=jnp.float32)
        mse = mse * tw[:, None]
        mae = mae * tw[:, None]

    return normal_loss_global_scale * (
        mse_weight * jnp.mean(mse) + mae_weight * jnp.mean(mae))


def _weighted_mse_mae_ref(inp, target, *, mse_weight=1.0, mae_weight=1.0,
                          normal_loss_global_scale=5e-5, lam=None):
    """Pure-JAX reference, mirroring the PyTorch module line by line."""
    w = jnp.full_like(target, _BALANCING_WEIGHTS[0])
    for i, thr in enumerate(_THRESHOLDS):
        w = w + (_BALANCING_WEIGHTS[i + 1] - _BALANCING_WEIGHTS[i]) * (
            target >= thr).astype(jnp.float32)
    diff = inp - target
    mse = jnp.sum(w * diff * diff, axis=(2, 3, 4))
    mae = jnp.sum(w * jnp.abs(diff), axis=(2, 3, 4))
    if lam is not None:
        S = mse.shape[0]
        tw = 1.0 + lam * jnp.arange(S, dtype=jnp.float32)
        mse = mse * tw[:, None]
        mae = mae * tw[:, None]
    return normal_loss_global_scale * (
        mse_weight * jnp.mean(mse) + mae_weight * jnp.mean(mae))


if __name__ == "__main__":
    key = jax.random.PRNGKey(0)
    k1, k2, k3, k4 = jax.random.split(key, 4)

    # Small shapes consistent with the module: (seq, batch, channel, H, W).
    S, B, C, H, W = 8, 2, 1, 16, 16
    inp = jax.random.uniform(k1, (S, B, C, H, W), jnp.float32)
    tgt = jax.random.uniform(k2, (S, B, C, H, W), jnp.float32)

    # Default config (LAMBDA=None), as in the PyTorch constructor defaults.
    out = jax.block_until_ready(weighted_mse_mae(inp, tgt))
    ref = _weighted_mse_mae_ref(inp, tgt)
    np.testing.assert_allclose(np.asarray(out), np.asarray(ref),
                               rtol=2e-5, atol=1e-8)

    # Exercise the LAMBDA (sequence-weighted) path as well.
    out_l = jax.block_until_ready(weighted_mse_mae(inp, tgt, lam=0.5))
    ref_l = _weighted_mse_mae_ref(inp, tgt, lam=0.5)
    np.testing.assert_allclose(np.asarray(out_l), np.asarray(ref_l),
                               rtol=2e-5, atol=1e-8)

    # Ragged shapes: exercise the in-kernel remainder masking (no HBM padding).
    S2, B2, C2, H2, W2 = 3, 2, 3, 17, 17
    inp2 = jax.random.uniform(k3, (S2, B2, C2, H2, W2), jnp.float32)
    tgt2 = jax.random.uniform(k4, (S2, B2, C2, H2, W2), jnp.float32)
    out2 = jax.block_until_ready(weighted_mse_mae(inp2, tgt2))
    ref2 = _weighted_mse_mae_ref(inp2, tgt2)
    np.testing.assert_allclose(np.asarray(out2), np.asarray(ref2),
                               rtol=2e-5, atol=1e-8)

    # bf16 inputs: cast happens inside the kernel (halves HBM read traffic).
    inp_bf = inp.astype(jnp.bfloat16)
    tgt_bf = tgt.astype(jnp.bfloat16)
    out_bf = jax.block_until_ready(weighted_mse_mae(inp_bf, tgt_bf))
    ref_bf = _weighted_mse_mae_ref(inp_bf.astype(jnp.float32),
                                   tgt_bf.astype(jnp.float32))
    np.testing.assert_allclose(np.asarray(out_bf), np.asarray(ref_bf),
                               rtol=2e-5, atol=1e-8)

    print("KERNEL_OK")
</pallas_src>

<mosaic_0001>
module attributes {stable_mosaic.version = 11 : i64} {
  func.func @kernel(%arg0: i32, %arg1: i32, %arg2: memref<16x256xf32, #tpu.memory_space<vmem>>, %arg3: memref<16x256xf32, #tpu.memory_space<vmem>>, %arg4: memref<16x1xf32, #tpu.memory_space<vmem>>, %arg5: memref<16x1xf32, #tpu.memory_space<vmem>>) attributes {dimension_semantics = [#tpu.dimension_semantics<parallel>, #tpu.dimension_semantics<arbitrary>], iteration_bounds = array<i64: 1, 1>, scalar_prefetch = 0 : i64, scratch_operands = 0 : i64, tpu.core_type = #tpu.core_type<tc>, window_params = [{transform_indices = @transform_0, window_bounds = array<i64: 16, 256>}, {transform_indices = @transform_1, window_bounds = array<i64: 16, 256>}, {transform_indices = @transform_2, window_bounds = array<i64: 16, 1>}, {transform_indices = @transform_3, window_bounds = array<i64: 16, 1>}]} {
    %c0_i32 = arith.constant 0 : i32
    %0 = arith.cmpi eq, %arg1, %c0_i32 : i32
    %1 = arith.extui %0 : i1 to i32
    %c0_i32_0 = arith.constant 0 : i32
    %2 = arith.cmpi ne, %1, %c0_i32_0 : i32
    scf.if %2 {
      %cst_22 = arith.constant 0.000000e+00 : f32
      %48 = vector.broadcast %cst_22 : f32 to vector<16x1xf32>
      %c0_23 = arith.constant 0 : index
      %c0_24 = arith.constant 0 : index
      %49 = vector.load %arg4[%c0_23, %c0_24] : memref<16x1xf32, #tpu.memory_space<vmem>>, vector<16x1xf32>
      tpu.vector_store %arg4[%c0_23, %c0_24], %48 {strides = array<i32>} : memref<16x1xf32, #tpu.memory_space<vmem>>, vector<16x1xf32>,
      %cst_25 = arith.constant 0.000000e+00 : f32
      %50 = vector.broadcast %cst_25 : f32 to vector<16x1xf32>
      %c0_26 = arith.constant 0 : index
      %c0_27 = arith.constant 0 : index
      %51 = vector.load %arg5[%c0_26, %c0_27] : memref<16x1xf32, #tpu.memory_space<vmem>>, vector<16x1xf32>
      tpu.vector_store %arg5[%c0_26, %c0_27], %50 {strides = array<i32>} : memref<16x1xf32, #tpu.memory_space<vmem>>, vector<16x1xf32>,
    } else {
    }
    %c0 = arith.constant 0 : index
    %c0_1 = arith.constant 0 : index
    %3 = vector.load %arg2[%c0, %c0_1] : memref<16x256xf32, #tpu.memory_space<vmem>>, vector<16x256xf32>
    %c0_2 = arith.constant 0 : index
    %c0_3 = arith.constant 0 : index
    %4 = vector.load %arg3[%c0_2, %c0_3] : memref<16x256xf32, #tpu.memory_space<vmem>>, vector<16x256xf32>
    %cst = arith.constant 1.000000e+00 : f32
    %5 = vector.broadcast %cst : f32 to vector<16x256xf32>
    %cst_4 = arith.constant 0.209424078 : f32
    %6 = vector.broadcast %cst_4 : f32 to vector<16x256xf32>
    %7 = arith.cmpf oge, %4, %6 : vector<16x256xf32>
    %8 = arith.extui %7 : vector<16x256xi1> to vector<16x256xi32>
    %9 = arith.sitofp %8 : vector<16x256xi32> to vector<16x256xf32>
    %cst_5 = arith.constant 1.000000e+00 : f32
    %10 = vector.broadcast %cst_5 : f32 to vector<16x256xf32>
    %11 = arith.mulf %10, %9 : vector<16x256xf32>
    %12 = arith.addf %5, %11 : vector<16x256xf32>
    %cst_6 = arith.constant 0.314136118 : f32
    %13 = vector.broadcast %cst_6 : f32 to vector<16x256xf32>
    %14 = arith.cmpf oge, %4, %13 : vector<16x256xf32>
    %15 = arith.extui %14 : vector<16x256xi1> to vector<16x256xi32>
    %16 = arith.sitofp %15 : vector<16x256xi32> to vector<16x256xf32>
    %cst_7 = arith.constant 3.000000e+00 : f32
    %17 = vector.broadcast %cst_7 : f32 to vector<16x256xf32>
    %18 = arith.mulf %17, %16 : vector<16x256xf32>
    %19 = arith.addf %12, %18 : vector<16x256xf32>
    %cst_8 = arith.constant 0.418848157 : f32
    %20 = vector.broadcast %cst_8 : f32 to vector<16x256xf32>
    %21 = arith.cmpf oge, %4, %20 : vector<16x256xf32>
    %22 = arith.extui %21 : vector<16x256xi1> to vector<16x256xi32>
    %23 = arith.sitofp %22 : vector<16x256xi32> to vector<16x256xf32>
    %cst_9 = arith.constant 5.000000e+00 : f32
    %24 = vector.broadcast %cst_9 : f32 to vector<16x256xf32>
    %25 = arith.mulf %24, %23 : vector<16x256xf32>
    %26 = arith.addf %19, %25 : vector<16x256xf32>
    %cst_10 = arith.constant 0.523560226 : f32
    %27 = vector.broadcast %cst_10 : f32 to vector<16x256xf32>
    %28 = arith.cmpf oge, %4, %27 : vector<16x256xf32>
    %29 = arith.extui %28 : vector<16x256xi1> to vector<16x256xi32>
    %30 = arith.sitofp %29 : vector<16x256xi32> to vector<16x256xf32>
    %cst_11 = arith.constant 2.000000e+01 : f32
    %31 = vector.broadcast %cst_11 : f32 to vector<16x256xf32>
    %32 = arith.mulf %31, %30 : vector<16x256xf32>
    %33 = arith.addf %26, %32 : vector<16x256xf32>
    %34 = arith.subf %3, %4 : vector<16x256xf32>
    %35 = math.absf %34 : vector<16x256xf32>
    %36 = arith.mulf %33, %35 : vector<16x256xf32>
    %37 = arith.mulf %36, %35 : vector<16x256xf32>
    %c0_12 = arith.constant 0 : index
    %c0_13 = arith.constant 0 : index
    %38 = vector.load %arg4[%c0_12, %c0_13] : memref<16x1xf32, #tpu.memory_space<vmem>>, vector<16x1xf32>
    %cst_14 = arith.constant dense<0.000000e+00> : vector<16xf32>
    %39 = vector.multi_reduction <add>, %37, %cst_14 [1] : vector<16x256xf32> to vector<16xf32>
    %40 = vector.shape_cast %39 : vector<16xf32> to vector<16x1xf32>
    %41 = arith.addf %38, %40 : vector<16x1xf32>
    %c0_15 = arith.constant 0 : index
    %c0_16 = arith.constant 0 : index
    %42 = vector.load %arg4[%c0_15, %c0_16] : memref<16x1xf32, #tpu.memory_space<vmem>>, vector<16x1xf32>
    tpu.vector_store %arg4[%c0_15, %c0_16], %41 {strides = array<i32>} : memref<16x1xf32, #tpu.memory_space<vmem>>, vector<16x1xf32>,
    %c0_17 = arith.constant 0 : index
    %c0_18 = arith.constant 0 : index
    %43 = vector.load %arg5[%c0_17, %c0_18] : memref<16x1xf32, #tpu.memory_space<vmem>>, vector<16x1xf32>
    %cst_19 = arith.constant dense<0.000000e+00> : vector<16xf32>
    %44 = vector.multi_reduction <add>, %36, %cst_19 [1] : vector<16x256xf32> to vector<16xf32>
    %45 = vector.shape_cast %44 : vector<16xf32> to vector<16x1xf32>
    %46 = arith.addf %43, %45 : vector<16x1xf32>
    %c0_20 = arith.constant 0 : index
    %c0_21 = arith.constant 0 : index
    %47 = vector.load %arg5[%c0_20, %c0_21] : memref<16x1xf32, #tpu.memory_space<vmem>>, vector<16x1xf32>
    tpu.vector_store %arg5[%c0_20, %c0_21], %46 {strides = array<i32>} : memref<16x1xf32, #tpu.memory_space<vmem>>, vector<16x1xf32>,
    return
  }
  func.func @transform_0(%arg0: i32, %arg1: i32) -> (i32, i32) {
    %c0_i32 = arith.constant 0 : i32
    return %arg0, %arg1 : i32, i32
  }
  func.func @transform_1(%arg0: i32, %arg1: i32) -> (i32, i32) {
    %c0_i32 = arith.constant 0 : i32
    return %arg0, %arg1 : i32, i32
  }
  func.func @transform_2(%arg0: i32, %arg1: i32) -> (i32, i32) {
    %c0_i32 = arith.constant 0 : i32
    %c0_i32_0 = arith.constant 0 : i32
    return %arg0, %c0_i32 : i32, i32
  }
  func.func @transform_3(%arg0: i32, %arg1: i32) -> (i32, i32) {
    %c0_i32 = arith.constant 0 : i32
    %c0_i32_0 = arith.constant 0 : i32
    return %arg0, %c0_i32 : i32, i32
  }
}

</mosaic_0001>

<bundles_post_ra>
// kernel: weighted_mse_mae.1
= control target key start
LH: loop header
LB: loop body
LE: loop exit
PB: predicated region body
PF: predicated region fallthrough
CT: control target
= control target key end

     0   :  { %vm17_vm0 = vcmask 7168   ;;  %v172_v2 = vmov 0.0   ;;  %s281_s0 = inlined_call_operand.vmem [shape: f32[16,256], index: 0, kind: input, shape index: {}]   ;;  %s282_s1 = inlined_call_operand.vmem [shape: f32[16,256], index: 1, kind: input, shape index: {}]   ;;  %s283_s3 = inlined_call_operand.vmem [shape: f32[16,1], index: 3, kind: output, shape index: {1}]   ;;  %s284_s2 = inlined_call_operand.vmem [shape: f32[16,1], index: 2, kind: output, shape index: {0}]  }
   0x1   :  { %v22_v0 = vld [vmem:[%s281_s0] sm:$0xff]  ;;  %20 = vst.msk [vmem:[%s283_s3] sm:$0xff] %vm17_vm0, %v172_v2  ;;  %21 = vst.msk [vmem:[%s283_s3 + $0x8] sm:$0xff] %vm17_vm0, %v172_v2  ;;  %v27_v3 = vld [vmem:[%s282_s1 + $0x8] sm:$0xff] }
   0x2   :  { %v26_v1 = vld [vmem:[%s282_s1] sm:$0xff]  ;;  %vm31_vm3 = vcmp.ge.f32.partialorder %v27_v3, 0.20942408  ;;  %vm47_vm4 = vcmp.ge.f32.partialorder %v27_v3, 0.31413612  ;;  %v23_v7 = vld [vmem:[%s281_s0 + $0x8] sm:$0xff] }
   0x3   :  { %vm30_vm1 = vcmp.ge.f32.partialorder %v26_v1, 0.20942408  ;;  %vm46_vm2 = vcmp.ge.f32.partialorder %v26_v1, 0.31413612  ;;  %v106_v4 = vsub.f32 %v22_v0, %v26_v1  ;;  %v156_v8 = vsel %vm31_vm3, 1.0, %v172_v2  ;;  %v24_v17 = vld [vmem:[%s281_s0 + $0x10] sm:$0xff] }
   0x4   :  { %v155_v5 = vsel %vm30_vm1, 1.0, %v172_v2  ;;  %v159_v6 = vsel %vm46_vm2, 1.0, %v172_v2  ;;  %v160_v10 = vsel %vm47_vm4, 1.0, %v172_v2  ;;  %v43_v12 = vadd.f32 1.0, %v156_v8  ;;  %v28_v21 = vld [vmem:[%s282_s1 + $0x10] sm:$0xff]  ;;  %v29_v22 = vld [vmem:[%s282_s1 + $0x18] sm:$0xff] }
   0x5   :  { %v42_v9 = vadd.f32 1.0, %v155_v5  ;;  %v58_v11 = vmul.f32 3.0, %v159_v6  ;;  %v59_v13 = vmul.f32 3.0, %v160_v10  ;;  %vm66_vm5 = vcmp.ge.f32.partialorder %v26_v1, 0.41884816  ;;  %v25_v48 = vld [vmem:[%s281_s0 + $0x18] sm:$0xff] }
   0x6   :  { %vm67_vm6 = vcmp.ge.f32.partialorder %v27_v3, 0.41884816  ;;  %v163_v15 = vsel %vm66_vm5, 1.0, %v172_v2  ;;  %vm86_vm7 = vcmp.ge.f32.partialorder %v26_v1, 0.5235602  ;;  %v107_v25 = vsub.f32 %v23_v7, %v27_v3  ;;  %18 = vst.msk [vmem:[%s284_s2] sm:$0xff] %vm17_vm0, %v172_v2 }
   0x7   :  { %v62_v14 = vadd.f32 %v58_v11, %v42_v9  ;;  %v164_v16 = vsel %vm67_vm6, 1.0, %v172_v2  ;;  %v63_v18 = vadd.f32 %v59_v13, %v43_v12  ;;  %v78_v19 = vmul.f32 5.0, %v163_v15  ;;  %19 = vst.msk [vmem:[%s284_s2 + $0x8] sm:$0xff] %vm17_vm0, %v172_v2 }
   0x8   :  { %v79_v20 = vmul.f32 5.0, %v164_v16  ;;  %vm87_vm8 = vcmp.ge.f32.partialorder %v27_v3, 0.5235602  ;;  %v167_v23 = vsel %vm86_vm7, 1.0, %v172_v2  ;;  %v110_v26 = vand.u32 2147483647, %v106_v4 }
   0x9   :  { %v168_v24 = vsel %vm87_vm8, 1.0, %v172_v2  ;;  %v82_v27 = vadd.f32 %v78_v19, %v62_v14  ;;  %v98_v29 = vmul.f32 20.0, %v167_v23  ;;  %v111_v31 = vand.u32 2147483647, %v107_v25  ;;  %v135_v10 = vld [vmem:[%s283_s3] sm:$0xff] }
   0xa   :  { %v83_v28 = vadd.f32 %v79_v20, %v63_v18  ;;  %v99_v30 = vmul.f32 20.0, %v168_v24  ;;  %vm32_vm9 = vcmp.ge.f32.partialorder %v28_v21, 0.20942408  ;;  %vm33_vm10 = vcmp.ge.f32.partialorder %v29_v22, 0.20942408 }
   0xb   :  { %v108_v32 = vsub.f32 %v24_v17, %v28_v21  ;;  %v102_v33 = vadd.f32 %v98_v29, %v82_v27  ;;  %v157_v35 = vsel %vm32_vm9, 1.0, %v172_v2  ;;  %v158_v36 = vsel %vm33_vm10, 1.0, %v172_v2 }
   0xc   :  { %v103_v34 = vadd.f32 %v99_v30, %v83_v28  ;;  %v44_v37 = vadd.f32 1.0, %v157_v35  ;;  %v45_v38 = vadd.f32 1.0, %v158_v36  ;;  %vm48_vm11 = vcmp.ge.f32.partialorder %v28_v21, 0.31413612 }
   0xd   :  { %vm49_vm12 = vcmp.ge.f32.partialorder %v29_v22, 0.31413612  ;;  %v114_v39 = vmul.f32 %v110_v26, %v102_v33  ;;  %v161_v41 = vsel %vm48_vm11, 1.0, %v172_v2  ;;  %vm68_vm13 = vcmp.ge.f32.partialorder %v28_v21, 0.41884816  ;;  %v122_v12 = vld [vmem:[%s284_s2] sm:$0xff] }
   0xe   :  { %v115_v40 = vmul.f32 %v111_v31, %v103_v34  ;;  %v162_v42 = vsel %vm49_vm12, 1.0, %v172_v2  ;;  %v60_v43 = vmul.f32 3.0, %v161_v41  ;;  %vm69_vm14 = vcmp.ge.f32.partialorder %v29_v22, 0.41884816  ;;  %v123_v17 = vld [vmem:[%s284_s2 + $0x8] sm:$0xff] }
   0xf   :  { %v61_v44 = vmul.f32 3.0, %v162_v42  ;;  %v118_v46 = vmul.f32 %v114_v39, %v110_v26  ;;  %v165_v49 = vsel %vm68_vm13, 1.0, %v172_v2  ;;  %v166_v52 = vsel %vm69_vm14, 1.0, %v172_v2 }
  0x10   :  { %v137_v45 = vadd.f32 %v115_v40, %v114_v39  ;;  %v119_v47 = vmul.f32 %v115_v40, %v111_v31  ;;  %v64_v50 = vadd.f32 %v60_v43, %v44_v37  ;;  %v80_v53 = vmul.f32 5.0, %v165_v49 }
  0x11   :  { %v65_v51 = vadd.f32 %v61_v44, %v45_v38  ;;  %v81_v55 = vmul.f32 5.0, %v166_v52  ;;  %vm88_vm15 = vcmp.ge.f32.partialorder %v28_v21, 0.5235602  ;;  %vm89_vm1 = vcmp.ge.f32.partialorder %v29_v22, 0.5235602 }
  0x12   :  { %138 = vadd.xlane.f32.xlu1 %v137_v45  ;;  %v124_v54 = vadd.f32 %v119_v47, %v118_v46  ;;  %v84_v56 = vadd.f32 %v80_v53, %v64_v50  ;;  %v169_v57 = vsel %vm88_vm15, 1.0, %v172_v2  ;;  %v170_v58 = vsel %vm89_vm1, 1.0, %v172_v2  ;;  %v136_v2 = vld [vmem:[%s283_s3 + $0x8] sm:$0xff] }
  0x13   :  { %v109_v59 = vsub.f32 %v25_v48, %v29_v22  ;;  %v85_v60 = vadd.f32 %v81_v55, %v65_v51  ;;  %v100_v61 = vmul.f32 20.0, %v169_v57  ;;  %v101_v62 = vmul.f32 20.0, %v170_v58 }
  0x14   :  { %125 = vadd.xlane.f32.xlu0 %v124_v54  ;;  %v112_v63 = vand.u32 2147483647, %v108_v32 }
  0x15   :  { %v113_v0 = vand.u32 2147483647, %v109_v59  ;;  %v104_v1 = vadd.f32 %v100_v61, %v84_v56  ;;  %v105_v3 = vadd.f32 %v101_v62, %v85_v60 }
  0x17   :  { %v116_v4 = vmul.f32 %v112_v63, %v104_v1  ;;  %v117_v5 = vmul.f32 %v113_v0, %v105_v3 }
  0x19   :  { %v140_v6 = vadd.f32 %v117_v5, %v116_v4  ;;  %v120_v7 = vmul.f32 %v116_v4, %v112_v63  ;;  %v121_v8 = vmul.f32 %v117_v5, %v113_v0 }
  0x1b   :  { %141 = vadd.xlane.f32.xlu1 %v140_v6  ;;  %v127_v9 = vadd.f32 %v121_v8, %v120_v7 }
  0x1d   :  { %128 = vadd.xlane.f32.xlu0 %v127_v9 }
  0x9b   :  { %v139_v11 = vpop.xlane.xlu1 %138 }
  0x9c   :  { %v143_v13 = vadd.f32 %v139_v11, %v135_v10 }
  0x9d   :  { %v126_v14 = vpop.xlane.xlu0 %125 }
  0x9e   :  { %145 = vst.msk [vmem:[%s283_s3] sm:$0xff] %vm17_vm0, %v143_v13  ;;  %v130_v15 = vadd.f32 %v126_v14, %v122_v12 }
  0xa0   :  { %133 = vst.msk [vmem:[%s284_s2] sm:$0xff] %vm17_vm0, %v130_v15 }
  0xa4   :  { %v142_v16 = vpop.xlane.xlu1 %141 }
  0xa5   :  { %v144_v18 = vadd.f32 %v142_v16, %v136_v2 }
  0xa6   :  { %v129_v19 = vpop.xlane.xlu0 %128 }
  0xa7   :  { %146 = vst.msk [vmem:[%s283_s3 + $0x8] sm:$0xff] %vm17_vm0, %v144_v18  ;;  %v131_v20 = vadd.f32 %v129_v19, %v123_v17 }
  0xa9   :  { %134 = vst.msk [vmem:[%s284_s2 + $0x8] sm:$0xff] %vm17_vm0, %v131_v20 }

</bundles_post_ra>
